<compile_context>
chip_gen: v5e
topology: v5e:2x2
jax: 0.10.0
libtpu: 0.0.40
codegen_flags: <defaults>
</compile_context>

<pallas_src>
import jax
import jax.numpy as jnp
from jax import lax
from jax.experimental import pallas as pl
from jax.experimental.pallas import tpu as pltpu

EPS = 1e-12            # F.normalize default eps (clamp on the norm)
EPS_SQ = EPS * EPS     # equivalent clamp on the squared norm (sqrt is monotone)


def _round_up(x, m):
    return ((x + m - 1) // m) * m


def vector_mean_kernel(x_ref, w_ref, b_ref, o_ref):
    x = x_ref[...]                                   # (tb, D)
    w = w_ref[...]                                   # (2, D)  resident
    b = b_ref[...]                                   # (2, 1)  resident
    # Lane-dense transposed result: contract D of (2, D) with D of (tb, D) -> (2, tb).
    vec = lax.dot_general(
        w, x, (((1,), (1,)), ((), ())), preferred_element_type=jnp.float32) + b
    # Only 2 valid rows -> stay on the VPU (no wide cross-lane reduce).
    v0 = vec[0:1, :]                                 # (1, tb)
    v1 = vec[1:2, :]                                 # (1, tb)
    sq_norm = v0 * v0 + v1 * v1                      # (1, tb)
    # rsqrt lands on the EUP slot; replaces sqrt + max + divide. Clamp keeps any
    # garbage lanes of a partial last block finite (their writes are masked anyway).
    inv_norm = lax.rsqrt(jnp.maximum(sq_norm, EPS_SQ))
    o_ref[...] = (vec * inv_norm).astype(o_ref.dtype)


def vector_mean(x, weight, bias):
    """x: (B, D) float32; weight: (2, D); bias: (2,) -> (B, 2) L2-normalized rows."""
    B, D = x.shape
    w = weight.astype(jnp.float32)                   # (2, D): lane-dense resident weight
    b = bias.reshape(2, 1).astype(jnp.float32)       # (2, 1)

    # ---- VMEM-aware batch-tile sizing (accounts for lane/sublane padding). ----
    try:
        vmem_cap = int(pltpu.get_tpu_info().vmem_capacity_bytes)
    except Exception:
        vmem_cap = 64 << 20                          # conservative fallback (v7x-sized)
    d_pad = _round_up(D, 128)
    x_row_bytes = d_pad * 4                          # one x row in VMEM (lane padded)
    o_col_bytes = 8 * 4                              # one out column ((2->8) sublanes)
    resident = 8 * d_pad * 4 + 8 * 128 * 4           # padded weight + bias blocks
    # ~1/3 of VMEM for the double-buffered pipeline, capped at 40 MiB:
    #   v7x (64 MiB)  -> ~21 MiB total, ~10 MiB per x buffer
    #   v5e/v6e (128) -> 40 MiB total,  ~20 MiB per x buffer
    pipeline_budget = min(vmem_cap // 3, 40 << 20)
    tb_cap = (pipeline_budget - resident) // (2 * (x_row_bytes + o_col_bytes))
    tb_cap = max(128, (tb_cap // 128) * 128)

    if B % 128 == 0 or B > tb_cap:
        # tb is a multiple of 128: valid as out-lane dim and x-sublane dim; the last
        # (possibly partial) block is clipped on read and masked on write by Pallas.
        tb = min(tb_cap, _round_up(B, 128))
    else:
        # Small / unaligned batch that fits one tile: use full-array block dims.
        tb = B

    grid = (pl.cdiv(B, tb),)

    vmem_needed = (2 * (_round_up(tb, 8) * x_row_bytes
                        + _round_up(tb, 128) * o_col_bytes)
                   + resident + (4 << 20))           # slack
    vmem_limit = int(min(vmem_cap, max(vmem_needed, 32 << 20)))

    out_t = pl.pallas_call(
        vector_mean_kernel,
        out_shape=jax.ShapeDtypeStruct((2, B), x.dtype),
        grid=grid,
        in_specs=[
            pl.BlockSpec((tb, D), lambda i: (i, 0)),   # x: streamed over batch
            pl.BlockSpec((2, D), lambda i: (0, 0)),    # weight: VMEM-resident
            pl.BlockSpec((2, 1), lambda i: (0, 0)),    # bias:   VMEM-resident
        ],
        out_specs=pl.BlockSpec((2, tb), lambda i: (0, i)),  # lane-dense output
        compiler_params=pltpu.CompilerParams(
            # "parallel" lets v7x shard the batch axis across its 2 TCs (no-op v5e/v6e).
            dimension_semantics=("parallel",),
            vmem_limit_bytes=vmem_limit,
        ),
        cost_estimate=pl.CostEstimate(
            flops=4 * B * D,                           # 2*B*D*2 matmul
            bytes_accessed=4 * B * D + 8 * B + 8 * D + 8,
            transcendentals=B,                         # one rsqrt per row
        ),
    )(x, w, b)

    return out_t.T                                     # (B, 2)


def reference(x, weight, bias):
    vec = x @ weight.T + bias
    norm = jnp.sqrt(jnp.sum(vec * vec, axis=-1, keepdims=True))
    return vec / jnp.maximum(norm, EPS)


if __name__ == "__main__":
    B, D = 8, 32  # small shapes: batch=8, input_dims=32

    key = jax.random.PRNGKey(0)
    kx, kw, kb = jax.random.split(key, 3)

    x = jax.random.normal(kx, (B, D), dtype=jnp.float32)
    # Deterministic init mirroring module __init__: uniform(-10, 10)
    weight = jax.random.uniform(kw, (2, D), minval=-10.0, maxval=10.0, dtype=jnp.float32)
    bias = jax.random.uniform(kb, (2,), minval=-10.0, maxval=10.0, dtype=jnp.float32)

    out = vector_mean(x, weight, bias)
    out = jax.block_until_ready(out)

    ref = reference(x, weight, bias)
    assert out.shape == (B, 2)
    assert jnp.allclose(out, ref, atol=1e-5, rtol=1e-5), "mismatch vs reference"

    print("KERNEL_OK")
</pallas_src>

<mosaic_0001>
module attributes {stable_mosaic.version = 11 : i64} {
  func.func @vector_mean_kernel(%arg0: i32, %arg1: memref<8x32xf32, #tpu.memory_space<vmem>>, %arg2: memref<2x32xf32, #tpu.memory_space<vmem>>, %arg3: memref<2x1xf32, #tpu.memory_space<vmem>>, %arg4: memref<2x8xf32, #tpu.memory_space<vmem>>) attributes {dimension_semantics = [#tpu.dimension_semantics<parallel>], iteration_bounds = array<i64: 1>, scalar_prefetch = 0 : i64, scratch_operands = 0 : i64, tpu.core_type = #tpu.core_type<tc>, window_params = [{transform_indices = @transform_0, window_bounds = array<i64: 8, 32>}, {pipeline_mode = #tpu.pipeline_mode<synchronous>, transform_indices = @transform_1, window_bounds = array<i64: 2, 32>}, {pipeline_mode = #tpu.pipeline_mode<synchronous>, transform_indices = @transform_2, window_bounds = array<i64: 2, 1>}, {transform_indices = @transform_3, window_bounds = array<i64: 2, 8>}]} {
    %c0 = arith.constant 0 : index
    %c0_0 = arith.constant 0 : index
    %0 = vector.load %arg1[%c0, %c0_0] : memref<8x32xf32, #tpu.memory_space<vmem>>, vector<8x32xf32>
    %c0_1 = arith.constant 0 : index
    %c0_2 = arith.constant 0 : index
    %1 = vector.load %arg2[%c0_1, %c0_2] : memref<2x32xf32, #tpu.memory_space<vmem>>, vector<2x32xf32>
    %c0_3 = arith.constant 0 : index
    %c0_4 = arith.constant 0 : index
    %2 = vector.load %arg3[%c0_3, %c0_4] : memref<2x1xf32, #tpu.memory_space<vmem>>, vector<2x1xf32>
    %cst = arith.constant dense<0.000000e+00> : vector<2x8xf32>
    %3 = tpu.matmul %1, %0, %cst {dimension_numbers = #tpu.dot_dimension_numbers<[1], [1], [0], [0], [0, 0, 1, 0], [], []>} : vector<2x32xf32>, vector<8x32xf32>, vector<2x8xf32> -> vector<2x8xf32>
    %4 = vector.broadcast %2 : vector<2x1xf32> to vector<2x8xf32>
    %5 = arith.addf %3, %4 : vector<2x8xf32>
    %6 = vector.extract_strided_slice %5 {offsets = [0, 0], sizes = [1, 8], strides = [1, 1]} : vector<2x8xf32> to vector<1x8xf32>
    %7 = vector.extract_strided_slice %5 {offsets = [1, 0], sizes = [1, 8], strides = [1, 1]} : vector<2x8xf32> to vector<1x8xf32>
    %8 = arith.mulf %6, %6 : vector<1x8xf32>
    %9 = arith.mulf %7, %7 : vector<1x8xf32>
    %10 = arith.addf %8, %9 : vector<1x8xf32>
    %cst_5 = arith.constant 1.000000e-24 : f32
    %11 = vector.broadcast %cst_5 : f32 to vector<1x8xf32>
    %12 = arith.maximumf %10, %11 : vector<1x8xf32>
    %13 = math.rsqrt %12 : vector<1x8xf32>
    %14 = vector.broadcast %13 : vector<1x8xf32> to vector<2x8xf32>
    %15 = arith.mulf %5, %14 : vector<2x8xf32>
    %c0_6 = arith.constant 0 : index
    %c0_7 = arith.constant 0 : index
    %16 = vector.load %arg4[%c0_6, %c0_7] : memref<2x8xf32, #tpu.memory_space<vmem>>, vector<2x8xf32>
    tpu.vector_store %arg4[%c0_6, %c0_7], %15 {strides = array<i32>} : memref<2x8xf32, #tpu.memory_space<vmem>>, vector<2x8xf32>,
    return
  }
  func.func @transform_0(%arg0: i32) -> (i32, i32) {
    %c0_i32 = arith.constant 0 : i32
    %c0_i32_0 = arith.constant 0 : i32
    return %arg0, %c0_i32 : i32, i32
  }
  func.func @transform_1(%arg0: i32) -> (i32, i32) {
    %c0_i32 = arith.constant 0 : i32
    %c0_i32_0 = arith.constant 0 : i32
    %c0_i32_1 = arith.constant 0 : i32
    return %c0_i32, %c0_i32_0 : i32, i32
  }
  func.func @transform_2(%arg0: i32) -> (i32, i32) {
    %c0_i32 = arith.constant 0 : i32
    %c0_i32_0 = arith.constant 0 : i32
    %c0_i32_1 = arith.constant 0 : i32
    return %c0_i32, %c0_i32_0 : i32, i32
  }
  func.func @transform_3(%arg0: i32) -> (i32, i32) {
    %c0_i32 = arith.constant 0 : i32
    %c0_i32_0 = arith.constant 0 : i32
    return %c0_i32, %arg0 : i32, i32
  }
}

</mosaic_0001>

<bundles_post_ra>
// kernel: tpu_custom_call.1
= control target key start
LH: loop header
LB: loop body
LE: loop exit
PB: predicated region body
PF: predicated region fallthrough
CT: control target
= control target key end

     0   :  { %8 = vsyncpa [#allocation3], 0  ;;  %s196_s0 = inlined_call_operand.hbm [shape: f32[8,32], index: 0, kind: input, shape index: {}]   ;;  %s197_s1 = inlined_call_operand.vmem [shape: f32[2,32], index: 1, kind: input, shape index: {}]   ;;  %s198_s2 = inlined_call_operand.vmem [shape: f32[2,1], index: 2, kind: input, shape index: {}]   ;;  %s199_s3 = inlined_call_operand.hbm [shape: f32[2,8], index: 3, kind: output, shape index: {}]  }
   0x1   :  { %9 = vsyncpa [#allocation4], 0  ;;  %s15_s14 = sshll.u32 %s196_s0, 4  ;;  %s161_s15 = smov [#allocation2]   ;;  %s16_s14 = int_to_ptr.hbm [resolvable:$true] %s15_s14 }
   0x2   :  { %s17_s16 = sshll.u32 %s161_s15, 4  ;;  %s18_s16 = int_to_ptr.vmem [resolvable:$true] %s17_s16 }
   0x3   :  { %20 = dma.hbm_to_vmem [thread:$0]  %s16_s14, 128, %s18_s16, [#allocation3]  }
   0x4   :  { %157 = dma.done.wait [#allocation3], 128  }
   0x5   :  { %158 = vsyncadd [#allocation3], 4294967168  ;;  %v162_v0 = vmov 0   ;;  %vm37_vm0 = vcmask 261120   ;;  %v29_v1 = vld [vmem:[#allocation2] sm:$0xff]  ;;  %s163_s0 = smov [#allocation5]  }
   0x6   :  { %106 = vset.pattern.permute.xlu0 %v162_v0  ;;  %v31_v2 = vld [vmem:[%s198_s2] sm:$0x3]  ;;  %101 = vmatpush.xpose.msk.msra.mxu0 %vm37_vm0, %v29_v1  ;;  %s91_s22 = sshll.u32 %s199_s3, 4  ;;  %vm82_vm4 = vcmask 58368   ;;  %s92_s22 = int_to_ptr.hbm [resolvable:$true] %s91_s22 }
   0x7   :  { %v30_v3 = vld [vmem:[%s197_s1] sm:$0x3]  ;;  %34 = vperm.xlu0 %106, %v31_v2   ;;  %s89_s1 = sshll.u32 %s163_s0, 4  ;;  %s90_s1 = int_to_ptr.vmem [resolvable:$true] %s89_s1 }
   0x9   :  { %102 = vmatmul.msk.f32.vlgmr.msra.gmra.mxu0 %vm37_vm0, %v30_v3 }
  0x79   :  { %v35_v4 = vpop.permute.xlu0 %34 }
  0x86   :  { %v61_v5 = vpop.f32.mrf.mxu0 }
  0x87   :  { %v62_v6 = vadd.f32 %v61_v5, %v35_v4 }
  0x89   :  { %v64_v7 = vmul.f32 %v62_v6, %v62_v6 }
  0x8b   :  { %v66_v8 = vrot.slane %v64_v7, 1 }
  0x8d   :  { %v68_v9 = vadd.f32 %v66_v8, %v64_v7 }
  0x8f   :  { %v69_v10 = vmax.f32 %v68_v9, 1e-24 }
  0x91   :  { %107 = vrsqrt.f32 %v69_v10  ;;  %vm76_vm2 = vweird.f32 %v69_v10 }
  0x97   :  { %v108_v11 = vpop.eup %107 }
  0x98   :  { %v71_v12 = vmul.f32 %v108_v11, %v69_v10  ;;  %vm77_vm1 = vweird.f32 %v108_v11 }
  0x99   :  { %vm78_vm3 = vmor %vm76_vm2, %vm77_vm1 }
  0x9a   :  { %v72_v13 = vmul.f32 %v108_v11, %v71_v12 }
  0x9c   :  { %v73_v14 = vmul.f32 0.5, %v72_v13 }
  0x9e   :  { %v74_v15 = vsub.f32 1.5, %v73_v14 }
  0xa0   :  { %v75_v16 = vmul.f32 %v108_v11, %v74_v15 }
  0xa2   :  { %v79_v17 = vsel %vm78_vm3, %v108_v11, %v75_v16 }
  0xa3   :  { %v80_v18 = vperm.slane %v79_v17, 0 }
  0xa5   :  { %v81_v19 = vmul.f32 %v80_v18, %v62_v6 }
  0xa7   :  { %83 = vst.msk [vmem:[#allocation5] sm:$0x3] %vm82_vm4, %v81_v19 }
  0xa8   :  { %94 = dma.vmem_to_hbm [thread:$0]  %s90_s1, 32, %s92_s22, [#allocation4]  }
  0xa9   :  { %159 = dma.done.wait [#allocation4], 32  }
  0xaa   :  { %160 = vsyncadd [#allocation4], 4294967264 }
  0xab   :  { %99 = vsyncpa [#allocation3], 1 }
  0xac   :  { %100 = vsyncpa [#allocation4], 1 }

</bundles_post_ra>
